<compile_context>
chip_gen: v6e
topology: v6e:2x2x1
jax: 0.10.0
libtpu: 0.0.40
codegen_flags: <defaults>
</compile_context>

<pallas_src>
import functools
import math

import jax
import jax.numpy as jnp
from jax.experimental import pallas as pl
from jax.experimental.pallas import tpu as pltpu


D_MODEL = 32
NUM_HEADS = 4
D_K = D_MODEL // NUM_HEADS
SEQ = 8
BATCH = 2
NEG_INF = -1000000000.0


def mha_kernel(x_ref, bias_ref, w_ref, b_ref, o_ref, *,
               batch, seq, d_model, num_heads):
    """Single-invocation fused MHA.

    x_ref    : (B*S, D)      activations, batch folded into M
    bias_ref : (B, S, S)     additive mask bias (0 or -1e9)
    w_ref    : (D, 4*D)      [Wq*scale | Wk | Wv | Wo]   (lane-dense, 128 wide)
    b_ref    : (1, 4*D)      [bq*scale | bk | bv | bo]   (lane-dense, 128 wide)
    o_ref    : (B*S, D)      output
    """
    d_k = d_model // num_heads

    x = x_ref[...]                       # (B*S, D)
    w = w_ref[...]                       # (D, 4D)
    b = b_ref[...]                       # (1, 4D)

    # One fused projection matmul. Columns 0:3D of `proj` are q|k|v; columns
    # 3D:4D are x @ Wo (unused) -- computing them is free at this width and
    # keeps the weight/bias operands as single lane-dense slabs.
    proj = jnp.dot(x, w, preferred_element_type=jnp.float32) + b   # (B*S, 4D)

    b_o = b[:, 3 * d_model:]                                       # (1, D)

    for bt in range(batch):                       # static, unrolled (B = 2)
        rows = slice(bt * seq, (bt + 1) * seq)
        mask_bias = bias_ref[bt]                  # (S, S) additive bias
        acc = jnp.zeros((seq, d_model), jnp.float32)

        for h in range(num_heads):                # static, unrolled (H = 4)
            cq = slice(h * d_k, (h + 1) * d_k)
            ck = slice(d_model + h * d_k, d_model + (h + 1) * d_k)
            cv = slice(2 * d_model + h * d_k, 2 * d_model + (h + 1) * d_k)
            qh = proj[rows, cq]                   # (S, d_k); scale folded into Wq
            kh = proj[rows, ck]                   # (S, d_k)
            vh = proj[rows, cv]                   # (S, d_k)

            # Scores + additive mask bias (scale already folded into Wq/bq).
            scores = jnp.einsum("qd,kd->qk", qh, kh,
                                preferred_element_type=jnp.float32) + mask_bias

            # Numerically stable softmax; EUP approx reciprocal + 1 Newton step.
            m = jnp.max(scores, axis=-1, keepdims=True)
            e = jnp.exp(scores - m)
            s = jnp.sum(e, axis=-1, keepdims=True)
            r = pl.reciprocal(s, approx=True)
            r = r * (2.0 - s * r)                 # Newton refinement -> ~f32 accurate
            attn = e * r

            ctx = jnp.dot(attn, vh, preferred_element_type=jnp.float32)   # (S, d_k)

            # Fold "concat heads + output projection" into a per-head
            # accumulation: out = sum_h ctx_h @ Wo[h*d_k:(h+1)*d_k, :].
            wo_h = w[h * d_k:(h + 1) * d_k, 3 * d_model:]                 # (d_k, D)
            acc = acc + jnp.dot(ctx, wo_h, preferred_element_type=jnp.float32)

        o_ref[rows, :] = (acc + b_o).astype(o_ref.dtype)


def fuse_params(params, num_heads=NUM_HEADS):
    """One-time parameter prep: concat weights/biases into lane-dense slabs
    and fold the 1/sqrt(d_k) score scale into Wq / bq."""
    d_model = params["wq_t"].shape[0]
    d_k = d_model // num_heads
    scale = 1.0 / math.sqrt(d_k)
    w_all = jnp.concatenate(
        [params["wq_t"] * scale, params["wk_t"], params["wv_t"], params["wo_t"]],
        axis=1)                                                    # (D, 4D) = (32, 128)
    b_all = jnp.concatenate(
        [params["bq"] * scale, params["bk"], params["bv"], params["bo"]],
        axis=1)                                                    # (1, 4D) = (1, 128)
    return dict(w_all=w_all, b_all=b_all)


def multi_head_attention(x, mask, fused, *, num_heads=NUM_HEADS):
    """x: (B, S, D) f32; mask: (B, 1, S, S) (1 = attend, 0 = masked) or None."""
    B, S, D = x.shape
    x2d = x.reshape(B * S, D)                                       # free reshape

    if mask is None or mask.size == 0:
        mask_bias = jnp.zeros((B, S, S), jnp.float32)
    else:
        mask_bias = jnp.where(mask[:, 0] == 0, NEG_INF, 0.0).astype(jnp.float32)

    kernel = functools.partial(mha_kernel, batch=B, seq=S,
                               d_model=D, num_heads=num_heads)

    vmem_full = pl.BlockSpec(memory_space=pltpu.MemorySpace.VMEM)
    out2d = pl.pallas_call(
        kernel,
        out_shape=jax.ShapeDtypeStruct((B * S, D), jnp.float32),
        in_specs=[vmem_full, vmem_full, vmem_full, vmem_full],
        out_specs=vmem_full,
    )(x2d, mask_bias, fused["w_all"], fused["b_all"])
    return out2d.reshape(B, S, D)


def reference_mha(x, mask, params):
    """Pure-JAX reference mirroring the PyTorch forward."""
    B, S, D = x.shape
    def lin(t, w_t, b):
        return t @ w_t + b[0]
    q = lin(x, params["wq_t"], params["bq"])
    k = lin(x, params["wk_t"], params["bk"])
    v = lin(x, params["wv_t"], params["bv"])
    rs = lambda t: t.reshape(B, S, NUM_HEADS, D_K).transpose(0, 2, 1, 3)
    q, k, v = rs(q), rs(k), rs(v)
    scores = jnp.einsum("bhqd,bhkd->bhqk", q, k) / math.sqrt(D_K)
    scores = jnp.where(mask == 0, NEG_INF, scores)
    attn = jax.nn.softmax(scores, axis=-1)
    ctx = jnp.einsum("bhqk,bhkd->bhqd", attn, v)
    ctx = ctx.transpose(0, 2, 1, 3).reshape(B, S, D)
    return lin(ctx, params["wo_t"], params["bo"])


def init_params(key):
    """Deterministic nn.Linear-style params; stored transposed as (D_in, D_out)."""
    ks = jax.random.split(key, 8)
    bound = 1.0 / math.sqrt(D_MODEL)
    def make(kw, kb):
        w = jax.random.uniform(kw, (D_MODEL, D_MODEL), jnp.float32, -bound, bound)
        b = jax.random.uniform(kb, (1, D_MODEL), jnp.float32, -bound, bound)
        return w.T, b  # transposed weight
    wq_t, bq = make(ks[0], ks[1])
    wk_t, bk = make(ks[2], ks[3])
    wv_t, bv = make(ks[4], ks[5])
    wo_t, bo = make(ks[6], ks[7])
    return dict(wq_t=wq_t, bq=bq, wk_t=wk_t, bk=bk,
                wv_t=wv_t, bv=bv, wo_t=wo_t, bo=bo)


if __name__ == "__main__":
    key = jax.random.PRNGKey(0)
    k_x, k_p = jax.random.split(key, 2)

    x = jax.random.normal(k_x, (BATCH, SEQ, D_MODEL), dtype=jnp.float32)
    params = init_params(k_p)
    fused = fuse_params(params)

    # Causal mask (1 = attend, 0 = masked), broadcast over heads as (B,1,S,S).
    causal = jnp.tril(jnp.ones((SEQ, SEQ), dtype=jnp.float32))
    mask = jnp.broadcast_to(causal, (BATCH, 1, SEQ, SEQ))

    out = multi_head_attention(x, mask, fused)
    out = jax.block_until_ready(out)

    ref = reference_mha(x, mask, params)
    assert out.shape == (BATCH, SEQ, D_MODEL)
    assert jnp.allclose(out, ref, atol=2e-4, rtol=2e-4), "mismatch vs reference"

    print("KERNEL_OK")
</pallas_src>

<mosaic_0001>
module attributes {stable_mosaic.version = 11 : i64} {
  func.func @mha_kernel(%arg0: memref<16x32xf32, #tpu.memory_space<vmem>>, %arg1: memref<2x8x8xf32, #tpu.memory_space<vmem>>, %arg2: memref<32x128xf32, #tpu.memory_space<vmem>>, %arg3: memref<1x128xf32, #tpu.memory_space<vmem>>, %arg4: memref<16x32xf32, #tpu.memory_space<vmem>>) attributes {dimension_semantics = [], scalar_prefetch = 0 : i64, scratch_operands = 0 : i64, tpu.core_type = #tpu.core_type<tc>} {
    %c0 = arith.constant 0 : index
    %c0_0 = arith.constant 0 : index
    %0 = vector.load %arg0[%c0, %c0_0] : memref<16x32xf32, #tpu.memory_space<vmem>>, vector<16x32xf32>
    %c0_1 = arith.constant 0 : index
    %c0_2 = arith.constant 0 : index
    %1 = vector.load %arg2[%c0_1, %c0_2] : memref<32x128xf32, #tpu.memory_space<vmem>>, vector<32x128xf32>
    %c0_3 = arith.constant 0 : index
    %c0_4 = arith.constant 0 : index
    %2 = vector.load %arg3[%c0_3, %c0_4] : memref<1x128xf32, #tpu.memory_space<vmem>>, vector<1x128xf32>
    %cst = arith.constant dense<0.000000e+00> : vector<16x128xf32>
    %3 = tpu.matmul %0, %1, %cst {dimension_numbers = #tpu.dot_dimension_numbers<[1], [0], [0], [1], [0, 0, 1, 1], [], []>} : vector<16x32xf32>, vector<32x128xf32>, vector<16x128xf32> -> vector<16x128xf32>
    %4 = vector.broadcast %2 : vector<1x128xf32> to vector<16x128xf32>
    %5 = arith.addf %3, %4 : vector<16x128xf32>
    %6 = vector.extract_strided_slice %2 {offsets = [0, 96], sizes = [1, 32], strides = [1, 1]} : vector<1x128xf32> to vector<1x32xf32>
    %c0_5 = arith.constant 0 : index
    %c0_6 = arith.constant 0 : index
    %c0_7 = arith.constant 0 : index
    %7 = vector.load %arg1[%c0_5, %c0_6, %c0_7] : memref<2x8x8xf32, #tpu.memory_space<vmem>>, vector<1x8x8xf32>
    %8 = vector.shape_cast %7 : vector<1x8x8xf32> to vector<8x8xf32>
    %cst_8 = arith.constant 0.000000e+00 : f32
    %9 = vector.broadcast %cst_8 : f32 to vector<8x32xf32>
    %10 = vector.extract_strided_slice %5 {offsets = [0, 0], sizes = [8, 8], strides = [1, 1]} : vector<16x128xf32> to vector<8x8xf32>
    %11 = vector.extract_strided_slice %5 {offsets = [0, 32], sizes = [8, 8], strides = [1, 1]} : vector<16x128xf32> to vector<8x8xf32>
    %12 = vector.extract_strided_slice %5 {offsets = [0, 64], sizes = [8, 8], strides = [1, 1]} : vector<16x128xf32> to vector<8x8xf32>
    "tpu.trace_start"() <{level = 10 : i32, message = "qd,kd->qk"}> : () -> ()
    %cst_9 = arith.constant dense<0.000000e+00> : vector<8x8xf32>
    %13 = tpu.matmul %10, %11, %cst_9 {dimension_numbers = #tpu.dot_dimension_numbers<[1], [1], [0], [0], [0, 0, 1, 0], [], []>} : vector<8x8xf32>, vector<8x8xf32>, vector<8x8xf32> -> vector<8x8xf32>
    "tpu.trace_stop"() : () -> ()
    %14 = arith.addf %13, %8 : vector<8x8xf32>
    %cst_10 = arith.constant dense<0xFF800000> : vector<8xf32>
    %15 = vector.multi_reduction <maximumf>, %14, %cst_10 [1] : vector<8x8xf32> to vector<8xf32>
    %16 = vector.shape_cast %15 : vector<8xf32> to vector<8x1xf32>
    %17 = vector.broadcast %16 : vector<8x1xf32> to vector<8x8xf32>
    %18 = arith.subf %14, %17 : vector<8x8xf32>
    %19 = math.exp %18 : vector<8x8xf32>
    %cst_11 = arith.constant dense<0.000000e+00> : vector<8xf32>
    %20 = vector.multi_reduction <add>, %19, %cst_11 [1] : vector<8x8xf32> to vector<8xf32>
    %21 = vector.shape_cast %20 : vector<8xf32> to vector<8x1xf32>
    %22 = tpu.reciprocal %21 {approx = true} : vector<8x1xf32> -> vector<8x1xf32>
    %23 = arith.mulf %21, %22 : vector<8x1xf32>
    %cst_12 = arith.constant 2.000000e+00 : f32
    %24 = vector.broadcast %cst_12 : f32 to vector<8x1xf32>
    %25 = arith.subf %24, %23 : vector<8x1xf32>
    %26 = arith.mulf %22, %25 : vector<8x1xf32>
    %27 = vector.broadcast %26 : vector<8x1xf32> to vector<8x8xf32>
    %28 = arith.mulf %19, %27 : vector<8x8xf32>
    %cst_13 = arith.constant dense<0.000000e+00> : vector<8x8xf32>
    %29 = tpu.matmul %28, %12, %cst_13 {dimension_numbers = #tpu.dot_dimension_numbers<[1], [0], [0], [1], [0, 0, 1, 1], [], []>} : vector<8x8xf32>, vector<8x8xf32>, vector<8x8xf32> -> vector<8x8xf32>
    %30 = vector.extract_strided_slice %1 {offsets = [0, 96], sizes = [8, 32], strides = [1, 1]} : vector<32x128xf32> to vector<8x32xf32>
    %cst_14 = arith.constant dense<0.000000e+00> : vector<8x32xf32>
    %31 = tpu.matmul %29, %30, %cst_14 {dimension_numbers = #tpu.dot_dimension_numbers<[1], [0], [0], [1], [0, 0, 1, 1], [], []>} : vector<8x8xf32>, vector<8x32xf32>, vector<8x32xf32> -> vector<8x32xf32>
    %32 = arith.addf %9, %31 : vector<8x32xf32>
    %33 = vector.extract_strided_slice %5 {offsets = [0, 8], sizes = [8, 8], strides = [1, 1]} : vector<16x128xf32> to vector<8x8xf32>
    %34 = vector.extract_strided_slice %5 {offsets = [0, 40], sizes = [8, 8], strides = [1, 1]} : vector<16x128xf32> to vector<8x8xf32>
    %35 = vector.extract_strided_slice %5 {offsets = [0, 72], sizes = [8, 8], strides = [1, 1]} : vector<16x128xf32> to vector<8x8xf32>
    "tpu.trace_start"() <{level = 10 : i32, message = "qd,kd->qk"}> : () -> ()
    %cst_15 = arith.constant dense<0.000000e+00> : vector<8x8xf32>
    %36 = tpu.matmul %33, %34, %cst_15 {dimension_numbers = #tpu.dot_dimension_numbers<[1], [1], [0], [0], [0, 0, 1, 0], [], []>} : vector<8x8xf32>, vector<8x8xf32>, vector<8x8xf32> -> vector<8x8xf32>
    "tpu.trace_stop"() : () -> ()
    %37 = arith.addf %36, %8 : vector<8x8xf32>
    %cst_16 = arith.constant dense<0xFF800000> : vector<8xf32>
    %38 = vector.multi_reduction <maximumf>, %37, %cst_16 [1] : vector<8x8xf32> to vector<8xf32>
    %39 = vector.shape_cast %38 : vector<8xf32> to vector<8x1xf32>
    %40 = vector.broadcast %39 : vector<8x1xf32> to vector<8x8xf32>
    %41 = arith.subf %37, %40 : vector<8x8xf32>
    %42 = math.exp %41 : vector<8x8xf32>
    %cst_17 = arith.constant dense<0.000000e+00> : vector<8xf32>
    %43 = vector.multi_reduction <add>, %42, %cst_17 [1] : vector<8x8xf32> to vector<8xf32>
    %44 = vector.shape_cast %43 : vector<8xf32> to vector<8x1xf32>
    %45 = tpu.reciprocal %44 {approx = true} : vector<8x1xf32> -> vector<8x1xf32>
    %46 = arith.mulf %44, %45 : vector<8x1xf32>
    %cst_18 = arith.constant 2.000000e+00 : f32
    %47 = vector.broadcast %cst_18 : f32 to vector<8x1xf32>
    %48 = arith.subf %47, %46 : vector<8x1xf32>
    %49 = arith.mulf %45, %48 : vector<8x1xf32>
    %50 = vector.broadcast %49 : vector<8x1xf32> to vector<8x8xf32>
    %51 = arith.mulf %42, %50 : vector<8x8xf32>
    %cst_19 = arith.constant dense<0.000000e+00> : vector<8x8xf32>
    %52 = tpu.matmul %51, %35, %cst_19 {dimension_numbers = #tpu.dot_dimension_numbers<[1], [0], [0], [1], [0, 0, 1, 1], [], []>} : vector<8x8xf32>, vector<8x8xf32>, vector<8x8xf32> -> vector<8x8xf32>
    %53 = vector.extract_strided_slice %1 {offsets = [8, 96], sizes = [8, 32], strides = [1, 1]} : vector<32x128xf32> to vector<8x32xf32>
    %cst_20 = arith.constant dense<0.000000e+00> : vector<8x32xf32>
    %54 = tpu.matmul %52, %53, %cst_20 {dimension_numbers = #tpu.dot_dimension_numbers<[1], [0], [0], [1], [0, 0, 1, 1], [], []>} : vector<8x8xf32>, vector<8x32xf32>, vector<8x32xf32> -> vector<8x32xf32>
    %55 = arith.addf %32, %54 : vector<8x32xf32>
    %56 = vector.extract_strided_slice %5 {offsets = [0, 16], sizes = [8, 8], strides = [1, 1]} : vector<16x128xf32> to vector<8x8xf32>
    %57 = vector.extract_strided_slice %5 {offsets = [0, 48], sizes = [8, 8], strides = [1, 1]} : vector<16x128xf32> to vector<8x8xf32>
    %58 = vector.extract_strided_slice %5 {offsets = [0, 80], sizes = [8, 8], strides = [1, 1]} : vector<16x128xf32> to vector<8x8xf32>
    "tpu.trace_start"() <{level = 10 : i32, message = "qd,kd->qk"}> : () -> ()
    %cst_21 = arith.constant dense<0.000000e+00> : vector<8x8xf32>
    %59 = tpu.matmul %56, %57, %cst_21 {dimension_numbers = #tpu.dot_dimension_numbers<[1], [1], [0], [0], [0, 0, 1, 0], [], []>} : vector<8x8xf32>, vector<8x8xf32>, vector<8x8xf32> -> vector<8x8xf32>
    "tpu.trace_stop"() : () -> ()
    %60 = arith.addf %59, %8 : vector<8x8xf32>
    %cst_22 = arith.constant dense<0xFF800000> : vector<8xf32>
    %61 = vector.multi_reduction <maximumf>, %60, %cst_22 [1] : vector<8x8xf32> to vector<8xf32>
    %62 = vector.shape_cast %61 : vector<8xf32> to vector<8x1xf32>
    %63 = vector.broadcast %62 : vector<8x1xf32> to vector<8x8xf32>
    %64 = arith.subf %60, %63 : vector<8x8xf32>
    %65 = math.exp %64 : vector<8x8xf32>
    %cst_23 = arith.constant dense<0.000000e+00> : vector<8xf32>
    %66 = vector.multi_reduction <add>, %65, %cst_23 [1] : vector<8x8xf32> to vector<8xf32>
    %67 = vector.shape_cast %66 : vector<8xf32> to vector<8x1xf32>
    %68 = tpu.reciprocal %67 {approx = true} : vector<8x1xf32> -> vector<8x1xf32>
    %69 = arith.mulf %67, %68 : vector<8x1xf32>
    %cst_24 = arith.constant 2.000000e+00 : f32
    %70 = vector.broadcast %cst_24 : f32 to vector<8x1xf32>
    %71 = arith.subf %70, %69 : vector<8x1xf32>
    %72 = arith.mulf %68, %71 : vector<8x1xf32>
    %73 = vector.broadcast %72 : vector<8x1xf32> to vector<8x8xf32>
    %74 = arith.mulf %65, %73 : vector<8x8xf32>
    %cst_25 = arith.constant dense<0.000000e+00> : vector<8x8xf32>
    %75 = tpu.matmul %74, %58, %cst_25 {dimension_numbers = #tpu.dot_dimension_numbers<[1], [0], [0], [1], [0, 0, 1, 1], [], []>} : vector<8x8xf32>, vector<8x8xf32>, vector<8x8xf32> -> vector<8x8xf32>
    %76 = vector.extract_strided_slice %1 {offsets = [16, 96], sizes = [8, 32], strides = [1, 1]} : vector<32x128xf32> to vector<8x32xf32>
    %cst_26 = arith.constant dense<0.000000e+00> : vector<8x32xf32>
    %77 = tpu.matmul %75, %76, %cst_26 {dimension_numbers = #tpu.dot_dimension_numbers<[1], [0], [0], [1], [0, 0, 1, 1], [], []>} : vector<8x8xf32>, vector<8x32xf32>, vector<8x32xf32> -> vector<8x32xf32>
    %78 = arith.addf %55, %77 : vector<8x32xf32>
    %79 = vector.extract_strided_slice %5 {offsets = [0, 24], sizes = [8, 8], strides = [1, 1]} : vector<16x128xf32> to vector<8x8xf32>
    %80 = vector.extract_strided_slice %5 {offsets = [0, 56], sizes = [8, 8], strides = [1, 1]} : vector<16x128xf32> to vector<8x8xf32>
    %81 = vector.extract_strided_slice %5 {offsets = [0, 88], sizes = [8, 8], strides = [1, 1]} : vector<16x128xf32> to vector<8x8xf32>
    "tpu.trace_start"() <{level = 10 : i32, message = "qd,kd->qk"}> : () -> ()
    %cst_27 = arith.constant dense<0.000000e+00> : vector<8x8xf32>
    %82 = tpu.matmul %79, %80, %cst_27 {dimension_numbers = #tpu.dot_dimension_numbers<[1], [1], [0], [0], [0, 0, 1, 0], [], []>} : vector<8x8xf32>, vector<8x8xf32>, vector<8x8xf32> -> vector<8x8xf32>
    "tpu.trace_stop"() : () -> ()
    %83 = arith.addf %82, %8 : vector<8x8xf32>
    %cst_28 = arith.constant dense<0xFF800000> : vector<8xf32>
    %84 = vector.multi_reduction <maximumf>, %83, %cst_28 [1] : vector<8x8xf32> to vector<8xf32>
    %85 = vector.shape_cast %84 : vector<8xf32> to vector<8x1xf32>
    %86 = vector.broadcast %85 : vector<8x1xf32> to vector<8x8xf32>
    %87 = arith.subf %83, %86 : vector<8x8xf32>
    %88 = math.exp %87 : vector<8x8xf32>
    %cst_29 = arith.constant dense<0.000000e+00> : vector<8xf32>
    %89 = vector.multi_reduction <add>, %88, %cst_29 [1] : vector<8x8xf32> to vector<8xf32>
    %90 = vector.shape_cast %89 : vector<8xf32> to vector<8x1xf32>
    %91 = tpu.reciprocal %90 {approx = true} : vector<8x1xf32> -> vector<8x1xf32>
    %92 = arith.mulf %90, %91 : vector<8x1xf32>
    %cst_30 = arith.constant 2.000000e+00 : f32
    %93 = vector.broadcast %cst_30 : f32 to vector<8x1xf32>
    %94 = arith.subf %93, %92 : vector<8x1xf32>
    %95 = arith.mulf %91, %94 : vector<8x1xf32>
    %96 = vector.broadcast %95 : vector<8x1xf32> to vector<8x8xf32>
    %97 = arith.mulf %88, %96 : vector<8x8xf32>
    %cst_31 = arith.constant dense<0.000000e+00> : vector<8x8xf32>
    %98 = tpu.matmul %97, %81, %cst_31 {dimension_numbers = #tpu.dot_dimension_numbers<[1], [0], [0], [1], [0, 0, 1, 1], [], []>} : vector<8x8xf32>, vector<8x8xf32>, vector<8x8xf32> -> vector<8x8xf32>
    %99 = vector.extract_strided_slice %1 {offsets = [24, 96], sizes = [8, 32], strides = [1, 1]} : vector<32x128xf32> to vector<8x32xf32>
    %cst_32 = arith.constant dense<0.000000e+00> : vector<8x32xf32>
    %100 = tpu.matmul %98, %99, %cst_32 {dimension_numbers = #tpu.dot_dimension_numbers<[1], [0], [0], [1], [0, 0, 1, 1], [], []>} : vector<8x8xf32>, vector<8x32xf32>, vector<8x32xf32> -> vector<8x32xf32>
    %101 = arith.addf %78, %100 : vector<8x32xf32>
    %102 = vector.broadcast %6 : vector<1x32xf32> to vector<8x32xf32>
    %103 = arith.addf %101, %102 : vector<8x32xf32>
    %c0_33 = arith.constant 0 : index
    %c0_34 = arith.constant 0 : index
    %104 = vector.load %arg4[%c0_33, %c0_34] : memref<16x32xf32, #tpu.memory_space<vmem>>, vector<8x32xf32>
    tpu.vector_store %arg4[%c0_33, %c0_34], %103 {strides = array<i32>} : memref<16x32xf32, #tpu.memory_space<vmem>>, vector<8x32xf32>,
    %c1 = arith.constant 1 : index
    %c0_35 = arith.constant 0 : index
    %c0_36 = arith.constant 0 : index
    %105 = vector.load %arg1[%c1, %c0_35, %c0_36] : memref<2x8x8xf32, #tpu.memory_space<vmem>>, vector<1x8x8xf32>
    %106 = vector.shape_cast %105 : vector<1x8x8xf32> to vector<8x8xf32>
    %cst_37 = arith.constant 0.000000e+00 : f32
    %107 = vector.broadcast %cst_37 : f32 to vector<8x32xf32>
    %108 = vector.extract_strided_slice %5 {offsets = [8, 0], sizes = [8, 8], strides = [1, 1]} : vector<16x128xf32> to vector<8x8xf32>
    %109 = vector.extract_strided_slice %5 {offsets = [8, 32], sizes = [8, 8], strides = [1, 1]} : vector<16x128xf32> to vector<8x8xf32>
    %110 = vector.extract_strided_slice %5 {offsets = [8, 64], sizes = [8, 8], strides = [1, 1]} : vector<16x128xf32> to vector<8x8xf32>
    "tpu.trace_start"() <{level = 10 : i32, message = "qd,kd->qk"}> : () -> ()
    %cst_38 = arith.constant dense<0.000000e+00> : vector<8x8xf32>
    %111 = tpu.matmul %108, %109, %cst_38 {dimension_numbers = #tpu.dot_dimension_numbers<[1], [1], [0], [0], [0, 0, 1, 0], [], []>} : vector<8x8xf32>, vector<8x8xf32>, vector<8x8xf32> -> vector<8x8xf32>
    "tpu.trace_stop"() : () -> ()
    %112 = arith.addf %111, %106 : vector<8x8xf32>
    %cst_39 = arith.constant dense<0xFF800000> : vector<8xf32>
    %113 = vector.multi_reduction <maximumf>, %112, %cst_39 [1] : vector<8x8xf32> to vector<8xf32>
    %114 = vector.shape_cast %113 : vector<8xf32> to vector<8x1xf32>
    %115 = vector.broadcast %114 : vector<8x1xf32> to vector<8x8xf32>
    %116 = arith.subf %112, %115 : vector<8x8xf32>
    %117 = math.exp %116 : vector<8x8xf32>
    %cst_40 = arith.constant dense<0.000000e+00> : vector<8xf32>
    %118 = vector.multi_reduction <add>, %117, %cst_40 [1] : vector<8x8xf32> to vector<8xf32>
    %119 = vector.shape_cast %118 : vector<8xf32> to vector<8x1xf32>
    %120 = tpu.reciprocal %119 {approx = true} : vector<8x1xf32> -> vector<8x1xf32>
    %121 = arith.mulf %119, %120 : vector<8x1xf32>
    %cst_41 = arith.constant 2.000000e+00 : f32
    %122 = vector.broadcast %cst_41 : f32 to vector<8x1xf32>
    %123 = arith.subf %122, %121 : vector<8x1xf32>
    %124 = arith.mulf %120, %123 : vector<8x1xf32>
    %125 = vector.broadcast %124 : vector<8x1xf32> to vector<8x8xf32>
    %126 = arith.mulf %117, %125 : vector<8x8xf32>
    %cst_42 = arith.constant dense<0.000000e+00> : vector<8x8xf32>
    %127 = tpu.matmul %126, %110, %cst_42 {dimension_numbers = #tpu.dot_dimension_numbers<[1], [0], [0], [1], [0, 0, 1, 1], [], []>} : vector<8x8xf32>, vector<8x8xf32>, vector<8x8xf32> -> vector<8x8xf32>
    %128 = vector.extract_strided_slice %1 {offsets = [0, 96], sizes = [8, 32], strides = [1, 1]} : vector<32x128xf32> to vector<8x32xf32>
    %cst_43 = arith.constant dense<0.000000e+00> : vector<8x32xf32>
    %129 = tpu.matmul %127, %128, %cst_43 {dimension_numbers = #tpu.dot_dimension_numbers<[1], [0], [0], [1], [0, 0, 1, 1], [], []>} : vector<8x8xf32>, vector<8x32xf32>, vector<8x32xf32> -> vector<8x32xf32>
    %130 = arith.addf %107, %129 : vector<8x32xf32>
    %131 = vector.extract_strided_slice %5 {offsets = [8, 8], sizes = [8, 8], strides = [1, 1]} : vector<16x128xf32> to vector<8x8xf32>
    %132 = vector.extract_strided_slice %5 {offsets = [8, 40], sizes = [8, 8], strides = [1, 1]} : vector<16x128xf32> to vector<8x8xf32>
    %133 = vector.extract_strided_slice %5 {offsets = [8, 72], sizes = [8, 8], strides = [1, 1]} : vector<16x128xf32> to vector<8x8xf32>
    "tpu.trace_start"() <{level = 10 : i32, message = "qd,kd->qk"}> : () -> ()
    %cst_44 = arith.constant dense<0.000000e+00> : vector<8x8xf32>
    %134 = tpu.matmul %131, %132, %cst_44 {dimension_numbers = #tpu.dot_dimension_numbers<[1], [1], [0], [0], [0, 0, 1, 0], [], []>} : vector<8x8xf32>, vector<8x8xf32>, vector<8x8xf32> -> vector<8x8xf32>
    "tpu.trace_stop"() : () -> ()
    %135 = arith.addf %134, %106 : vector<8x8xf32>
    %cst_45 = arith.constant dense<0xFF800000> : vector<8xf32>
    %136 = vector.multi_reduction <maximumf>, %135, %cst_45 [1] : vector<8x8xf32> to vector<8xf32>
    %137 = vector.shape_cast %136 : vector<8xf32> to vector<8x1xf32>
    %138 = vector.broadcast %137 : vector<8x1xf32> to vector<8x8xf32>
    %139 = arith.subf %135, %138 : vector<8x8xf32>
    %140 = math.exp %139 : vector<8x8xf32>
    %cst_46 = arith.constant dense<0.000000e+00> : vector<8xf32>
    %141 = vector.multi_reduction <add>, %140, %cst_46 [1] : vector<8x8xf32> to vector<8xf32>
    %142 = vector.shape_cast %141 : vector<8xf32> to vector<8x1xf32>
    %143 = tpu.reciprocal %142 {approx = true} : vector<8x1xf32> -> vector<8x1xf32>
    %144 = arith.mulf %142, %143 : vector<8x1xf32>
    %cst_47 = arith.constant 2.000000e+00 : f32
    %145 = vector.broadcast %cst_47 : f32 to vector<8x1xf32>
    %146 = arith.subf %145, %144 : vector<8x1xf32>
    %147 = arith.mulf %143, %146 : vector<8x1xf32>
    %148 = vector.broadcast %147 : vector<8x1xf32> to vector<8x8xf32>
    %149 = arith.mulf %140, %148 : vector<8x8xf32>
    %cst_48 = arith.constant dense<0.000000e+00> : vector<8x8xf32>
    %150 = tpu.matmul %149, %133, %cst_48 {dimension_numbers = #tpu.dot_dimension_numbers<[1], [0], [0], [1], [0, 0, 1, 1], [], []>} : vector<8x8xf32>, vector<8x8xf32>, vector<8x8xf32> -> vector<8x8xf32>
    %151 = vector.extract_strided_slice %1 {offsets = [8, 96], sizes = [8, 32], strides = [1, 1]} : vector<32x128xf32> to vector<8x32xf32>
    %cst_49 = arith.constant dense<0.000000e+00> : vector<8x32xf32>
    %152 = tpu.matmul %150, %151, %cst_49 {dimension_numbers = #tpu.dot_dimension_numbers<[1], [0], [0], [1], [0, 0, 1, 1], [], []>} : vector<8x8xf32>, vector<8x32xf32>, vector<8x32xf32> -> vector<8x32xf32>
    %153 = arith.addf %130, %152 : vector<8x32xf32>
    %154 = vector.extract_strided_slice %5 {offsets = [8, 16], sizes = [8, 8], strides = [1, 1]} : vector<16x128xf32> to vector<8x8xf32>
    %155 = vector.extract_strided_slice %5 {offsets = [8, 48], sizes = [8, 8], strides = [1, 1]} : vector<16x128xf32> to vector<8x8xf32>
    %156 = vector.extract_strided_slice %5 {offsets = [8, 80], sizes = [8, 8], strides = [1, 1]} : vector<16x128xf32> to vector<8x8xf32>
    "tpu.trace_start"() <{level = 10 : i32, message = "qd,kd->qk"}> : () -> ()
    %cst_50 = arith.constant dense<0.000000e+00> : vector<8x8xf32>
    %157 = tpu.matmul %154, %155, %cst_50 {dimension_numbers = #tpu.dot_dimension_numbers<[1], [1], [0], [0], [0, 0, 1, 0], [], []>} : vector<8x8xf32>, vector<8x8xf32>, vector<8x8xf32> -> vector<8x8xf32>
    "tpu.trace_stop"() : () -> ()
    %158 = arith.addf %157, %106 : vector<8x8xf32>
    %cst_51 = arith.constant dense<0xFF800000> : vector<8xf32>
    %159 = vector.multi_reduction <maximumf>, %158, %cst_51 [1] : vector<8x8xf32> to vector<8xf32>
    %160 = vector.shape_cast %159 : vector<8xf32> to vector<8x1xf32>
    %161 = vector.broadcast %160 : vector<8x1xf32> to vector<8x8xf32>
    %162 = arith.subf %158, %161 : vector<8x8xf32>
    %163 = math.exp %162 : vector<8x8xf32>
    %cst_52 = arith.constant dense<0.000000e+00> : vector<8xf32>
    %164 = vector.multi_reduction <add>, %163, %cst_52 [1] : vector<8x8xf32> to vector<8xf32>
    %165 = vector.shape_cast %164 : vector<8xf32> to vector<8x1xf32>
    %166 = tpu.reciprocal %165 {approx = true} : vector<8x1xf32> -> vector<8x1xf32>
    %167 = arith.mulf %165, %166 : vector<8x1xf32>
    %cst_53 = arith.constant 2.000000e+00 : f32
    %168 = vector.broadcast %cst_53 : f32 to vector<8x1xf32>
    %169 = arith.subf %168, %167 : vector<8x1xf32>
    %170 = arith.mulf %166, %169 : vector<8x1xf32>
    %171 = vector.broadcast %170 : vector<8x1xf32> to vector<8x8xf32>
    %172 = arith.mulf %163, %171 : vector<8x8xf32>
    %cst_54 = arith.constant dense<0.000000e+00> : vector<8x8xf32>
    %173 = tpu.matmul %172, %156, %cst_54 {dimension_numbers = #tpu.dot_dimension_numbers<[1], [0], [0], [1], [0, 0, 1, 1], [], []>} : vector<8x8xf32>, vector<8x8xf32>, vector<8x8xf32> -> vector<8x8xf32>
    %174 = vector.extract_strided_slice %1 {offsets = [16, 96], sizes = [8, 32], strides = [1, 1]} : vector<32x128xf32> to vector<8x32xf32>
    %cst_55 = arith.constant dense<0.000000e+00> : vector<8x32xf32>
    %175 = tpu.matmul %173, %174, %cst_55 {dimension_numbers = #tpu.dot_dimension_numbers<[1], [0], [0], [1], [0, 0, 1, 1], [], []>} : vector<8x8xf32>, vector<8x32xf32>, vector<8x32xf32> -> vector<8x32xf32>
    %176 = arith.addf %153, %175 : vector<8x32xf32>
    %177 = vector.extract_strided_slice %5 {offsets = [8, 24], sizes = [8, 8], strides = [1, 1]} : vector<16x128xf32> to vector<8x8xf32>
    %178 = vector.extract_strided_slice %5 {offsets = [8, 56], sizes = [8, 8], strides = [1, 1]} : vector<16x128xf32> to vector<8x8xf32>
    %179 = vector.extract_strided_slice %5 {offsets = [8, 88], sizes = [8, 8], strides = [1, 1]} : vector<16x128xf32> to vector<8x8xf32>
    "tpu.trace_start"() <{level = 10 : i32, message = "qd,kd->qk"}> : () -> ()
    %cst_56 = arith.constant dense<0.000000e+00> : vector<8x8xf32>
    %180 = tpu.matmul %177, %178, %cst_56 {dimension_numbers = #tpu.dot_dimension_numbers<[1], [1], [0], [0], [0, 0, 1, 0], [], []>} : vector<8x8xf32>, vector<8x8xf32>, vector<8x8xf32> -> vector<8x8xf32>
    "tpu.trace_stop"() : () -> ()
    %181 = arith.addf %180, %106 : vector<8x8xf32>
    %cst_57 = arith.constant dense<0xFF800000> : vector<8xf32>
    %182 = vector.multi_reduction <maximumf>, %181, %cst_57 [1] : vector<8x8xf32> to vector<8xf32>
    %183 = vector.shape_cast %182 : vector<8xf32> to vector<8x1xf32>
    %184 = vector.broadcast %183 : vector<8x1xf32> to vector<8x8xf32>
    %185 = arith.subf %181, %184 : vector<8x8xf32>
    %186 = math.exp %185 : vector<8x8xf32>
    %cst_58 = arith.constant dense<0.000000e+00> : vector<8xf32>
    %187 = vector.multi_reduction <add>, %186, %cst_58 [1] : vector<8x8xf32> to vector<8xf32>
    %188 = vector.shape_cast %187 : vector<8xf32> to vector<8x1xf32>
    %189 = tpu.reciprocal %188 {approx = true} : vector<8x1xf32> -> vector<8x1xf32>
    %190 = arith.mulf %188, %189 : vector<8x1xf32>
    %cst_59 = arith.constant 2.000000e+00 : f32
    %191 = vector.broadcast %cst_59 : f32 to vector<8x1xf32>
    %192 = arith.subf %191, %190 : vector<8x1xf32>
    %193 = arith.mulf %189, %192 : vector<8x1xf32>
    %194 = vector.broadcast %193 : vector<8x1xf32> to vector<8x8xf32>
    %195 = arith.mulf %186, %194 : vector<8x8xf32>
    %cst_60 = arith.constant dense<0.000000e+00> : vector<8x8xf32>
    %196 = tpu.matmul %195, %179, %cst_60 {dimension_numbers = #tpu.dot_dimension_numbers<[1], [0], [0], [1], [0, 0, 1, 1], [], []>} : vector<8x8xf32>, vector<8x8xf32>, vector<8x8xf32> -> vector<8x8xf32>
    %197 = vector.extract_strided_slice %1 {offsets = [24, 96], sizes = [8, 32], strides = [1, 1]} : vector<32x128xf32> to vector<8x32xf32>
    %cst_61 = arith.constant dense<0.000000e+00> : vector<8x32xf32>
    %198 = tpu.matmul %196, %197, %cst_61 {dimension_numbers = #tpu.dot_dimension_numbers<[1], [0], [0], [1], [0, 0, 1, 1], [], []>} : vector<8x8xf32>, vector<8x32xf32>, vector<8x32xf32> -> vector<8x32xf32>
    %199 = arith.addf %176, %198 : vector<8x32xf32>
    %200 = vector.broadcast %6 : vector<1x32xf32> to vector<8x32xf32>
    %201 = arith.addf %199, %200 : vector<8x32xf32>
    %c8 = arith.constant 8 : index
    %c0_62 = arith.constant 0 : index
    %202 = vector.load %arg4[%c8, %c0_62] : memref<16x32xf32, #tpu.memory_space<vmem>>, vector<8x32xf32>
    tpu.vector_store %arg4[%c8, %c0_62], %201 {strides = array<i32>} : memref<16x32xf32, #tpu.memory_space<vmem>>, vector<8x32xf32>,
    return
  }
}

</mosaic_0001>

<bundles_post_ra>
// kernel: tpu_custom_call.1
= control target key start
LH: loop header
LB: loop body
LE: loop exit
PB: predicated region body
PF: predicated region fallthrough
CT: control target
= control target key end

     0   :  { %9 = vsyncpa [#allocation3], 0  ;;  %s2803_s0 = inlined_call_operand.hbm [shape: f32[16,32], index: 0, kind: input, shape index: {}]   ;;  %s2804_s1 = inlined_call_operand.hbm [shape: f32[2,8,8], index: 1, kind: input, shape index: {}]   ;;  %s2805_s2 = inlined_call_operand.hbm [shape: f32[32,128], index: 2, kind: input, shape index: {}]   ;;  %s2806_s3 = inlined_call_operand.vmem [shape: f32[1,128], index: 3, kind: input, shape index: {}]   ;;  %s2807_s4 = inlined_call_operand.hbm [shape: f32[16,32], index: 4, kind: output, shape index: {}]  }
   0x1   :  { %10 = vsyncpa [#allocation6], 0 }
   0x2   :  { %11 = vsyncpa [#allocation4], 0  ;;  %s2487_s15 = smov [#allocation5]   ;;  %s2488_s17 = smov [#allocation2]  }
   0x3   :  { %s29_s16 = sshll.u32 %s2487_s15, 4  ;;  %s17_s18 = sshll.u32 %s2488_s17, 4  ;;  %s30_s16 = int_to_ptr.vmem [resolvable:$true] %s29_s16  ;;  %s18_s18 = int_to_ptr.vmem [resolvable:$true] %s17_s18 }
   0x4   :  { %s2409_s19 = scalar_lea.vmem %s30_s16, 256  ;;  %p2414_p1 = scmp.lt.s32.totalorder %s30_s16, %s30_s16 }
   0x5   :  { %p2410_p0 = scmp.ne.s32.totalorder %s30_s16, %s2409_s19  ;;  %p2415_p2 = scmp.lt.s32.totalorder %s2409_s19, %s2409_s19 }
   0x7   :  { %p2416_p3 = por %p2415_p2, %p2414_p1 }
   0x9   :  { %p2417_p4 = pnand %p2416_p3, %p2410_p0 }
   0xb   :  { %2420 = shalt.err (!%p2417_p4)
}
   0xc   :  { %s2489_s20 = smov 128   ;;  %s2490_s21 = smov 8  }
   0xd   :  { %35 = dma.hbm_to_vmem [thread:$0]  %s2804_s1, 256, %s30_s16, [#allocation6], %s2489_s20, %s2489_s20, %s2490_s21  }
   0xe   :  { %s2429_s24 = scalar_lea.vmem %s18_s18, 256  ;;  %p2434_p6 = scmp.lt.s32.totalorder %s18_s18, %s18_s18 }
   0xf   :  { %p2430_p5 = scmp.ne.s32.totalorder %s18_s18, %s2429_s24  ;;  %p2435_p7 = scmp.lt.s32.totalorder %s2429_s24, %s2429_s24 }
  0x11   :  { %p2436_p8 = por %p2435_p7, %p2434_p6 }
  0x13   :  { %p2437_p9 = pnand %p2436_p8, %p2430_p5 }
  0x15   :  { %2440 = shalt.err (!%p2437_p9)
}
  0x16   :  { %23 = dma.hbm_to_vmem [thread:$0]  %s2803_s0, 256, %s18_s18, [#allocation3], %s2489_s20, %s2489_s20, %s2490_s21  }
  0x17   :  { %s2491_s27 = smov [#allocation7]  }
  0x18   :  { %s41_s28 = sshll.u32 %s2491_s27, 4  ;;  %s42_s28 = int_to_ptr.vmem [resolvable:$true] %s41_s28 }
  0x19   :  { %s2449_s29 = scalar_lea.vmem %s42_s28, 512  ;;  %p2454_p11 = scmp.lt.s32.totalorder %s42_s28, %s42_s28 }
  0x1a   :  { %p2450_p10 = scmp.ne.s32.totalorder %s42_s28, %s2449_s29  ;;  %p2455_p12 = scmp.lt.s32.totalorder %s2449_s29, %s2449_s29 }
  0x1c   :  { %p2456_p13 = por %p2455_p12, %p2454_p11 }
  0x1e   :  { %p2457_p0 = pnand %p2456_p13, %p2450_p10 }
  0x20   :  { %2460 = shalt.err (!%p2457_p0)
}
  0x21   :  { %47 = dma.hbm_to_vmem [thread:$0]  %s2805_s2, 512, %s42_s28, [#allocation6], %s2489_s20, %s2489_s20, %s2490_s21  }
  0x22   :  { %2481 = dma.done.wait [#allocation3], 256  }
  0x23   :  { %2482 = vsyncadd [#allocation3], 4294967040 }
  0x24   :  { %2483 = dma.done.wait [#allocation6], 768  }
  0x25   :  { %2484 = vsyncadd [#allocation6], 4294966528  ;;  %vm72_vm0 = vcmask 261120   ;;  %v2550_v0 = vld [vmem:[#allocation7 + $0x18] sm:$0xff]  ;;  %v2552_v1 = vld [vmem:[#allocation7 + $0x10] sm:$0xff]  ;;  %v2492_v6 = vmov 0.0  }
  0x26   :  { %2218 = vmatprep.subr.mxu0 %v2550_v0  ;;  %v59_v2 = vld [vmem:[#allocation2] sm:$0xff]  ;;  %v2556_v3 = vld [vmem:[#allocation7 + $0x8] sm:$0xff]  ;;  %2229 = vmatprep.subr.mxu1 %v2492_v6  ;;  %vm2493_vm1 = vmmov 0   ;;  %s2494_s5 = smov 120   ;;  %s2495_s6 = smov 96   ;;  %vm158_vm2 = vcmask 64512  }
  0x27   :  { %2219 = vmatpush3.msra.mxu0 %v2550_v0  ;;  %2226 = vmatprep.mubr.msk.f32.mxu0 %vm72_vm0, %v59_v2  ;;  %v2561_v4 = vld [vmem:[#allocation7] sm:$0xff]  ;;  %v60_v5 = vld [vmem:[#allocation2 + $0x8] sm:$0xff]  ;;  %s2496_s7 = smov 88   ;;  %v2601_v14 = vld [vmem:[#allocation5] sm:$0xff]  ;;  %s2498_s8 = smov 64  }
  0x28   :  { %2220 = vmatprep.subr.mxu0 %v2552_v1  ;;  %2231 = vmatprep.mubr.msk.f32.mxu1 %vm2493_vm1, %v2492_v6  ;;  %v2579_v8 = vld [vmem:[%s2806_s3] ss:$0 sm:$0xff]  ;;  %s2497_s3 = smov 56   ;;  %s2499_s9 = smov 32  }
  0x29   :  { %2221 = vmatpush3.msra.mxu0 %v2552_v1  ;;  %s2500_s10 = smov 80   ;;  %s2501_s11 = smov 112  }
  0x2a   :  { %2222 = vmatprep.subr.mxu0 %v2556_v3  ;;  %s2502_s12 = smov 72   ;;  %s2503_s13 = smov 48  }
  0x2b   :  { %2223 = vmatpush3.msra.mxu0 %v2556_v3  ;;  %s2504_s14 = smov 104   ;;  %s2505_s15 = smov 40  }
  0x2c   :  { %2224 = vmatprep.subr.mxu0 %v2561_v4  ;;  %s2506_s16 = smov [#allocation8]  }
  0x2d   :  { %2225 = vmatpush3.msra.mxu0 %v2561_v4  ;;  %s2116_s17 = sshll.u32 %s2506_s16, 4  ;;  %s2117_s17 = int_to_ptr.vmem [resolvable:$true] %s2116_s17 }
  0x2e   :  { %2227 = vmatmul.mubr.msk.f32.vlgmr.msra.gmra.mxu0 %vm72_vm0, %v60_v5  ;;  %2239 = vmatprep.subr.mxu0 %v2492_v6  ;;  %s2461_s18 = scalar_lea.vmem %s2117_s17, 256  ;;  %p2466_p2 = scmp.lt.s32.totalorder %s2117_s17, %s2117_s17 }
  0x2f   :  { %2241 = vmatprep.mubr.msk.f32.mxu0 %vm2493_vm1, %v2492_v6  ;;  %p2462_p1 = scmp.ne.s32.totalorder %s2117_s17, %s2461_s18  ;;  %p2467_p3 = scmp.lt.s32.totalorder %s2461_s18, %s2461_s18 }
  0x31   :  { %p2468_p4 = por %p2467_p3, %p2466_p2 }
  0x33   :  { %p2469_p5 = pnand %p2468_p4, %p2462_p1 }
  0xee   :  { %v2574_v7 = vpop.f32.mrf.mxu0 }
  0xf0   :  { %v145_v9 = vpop.f32.mrf.mxu0 }
  0xf1   :  { %v2582_v10 = vadd.f32 %v2579_v8, %v145_v9 }
  0xf3   :  { %323 = vrot.lane.b32.xlu1 %v2582_v10, %s2494_s5  ;;  %156 = vrot.lane.b32.xlu0 %v2582_v10, %s2495_s6 }
  0xf7   :  { %325 = vrot.lane.b32.xlu0 %v2582_v10, %s2496_s7 }
 0x165   :  { %v157_v11 = vpop.permute.xlu0 %156  ;;  %v324_v13 = vpop.permute.xlu1 %323 }
 0x166   :  { %2230 = vmatpush3.xpose.msk.msra.mxu1 %vm158_vm2, %v157_v11 }
 0x167   :  { %2234 = vmatprep.subr.mxu1 %v2492_v6 }
 0x169   :  { %2232 = vmatmul.mubr.msk.f32.vlgmr.msra.gmra.mxu1 %vm158_vm2, %v2582_v10  ;;  %v326_v12 = vpop.permute.xlu0 %325 }
 0x16a   :  { %2240 = vmatpush3.xpose.msk.msra.mxu0 %vm158_vm2, %v326_v12  ;;  %2236 = vmatprep.mubr.msk.f32.mxu1 %vm2493_vm1, %v2492_v6 }
 0x16b   :  { %2249 = vmatprep.subr.mxu0 %v2492_v6 }
 0x16d   :  { %2242 = vmatmul.mubr.msk.f32.vlgmr.msra.gmra.mxu0 %vm158_vm2, %v324_v13 }
 0x16e   :  { %2251 = vmatprep.mubr.msk.f32.mxu0 %vm2493_vm1, %v2492_v6 }
 0x229   :  { %v229_v15 = vpop.f32.mrf.mxu1 }
 0x22a   :  { %v230_v16 = vadd.f32 %v229_v15, %v2601_v14 }
 0x22b   :  { %v2233_v17 = vpop.f32.mrf.mxu1 }
 0x22c   :  { %v233_v18 = vsel %vm158_vm2, %v230_v16, -inf }
 0x22d   :  { %234 = vmax.xlane.f32.xlu1 %v233_v18  ;;  %v397_v19 = vpop.f32.mrf.mxu0 }
 0x22e   :  { %v398_v20 = vadd.f32 %v397_v19, %v2601_v14 }
 0x22f   :  { %v2243_v21 = vpop.f32.mrf.mxu0 }
 0x230   :  { %v401_v22 = vsel %vm158_vm2, %v398_v20, -inf }
 0x231   :  { %402 = vmax.xlane.f32.xlu0 %v401_v22 }
 0x2b6   :  { %v235_v23 = vpop.xlane.xlu1 %234 }
 0x2b7   :  { %v236_v24 = vsub.f32 %v230_v16, %v235_v23 }
 0x2b9   :  { %v237_v25 = vmul.f32 1.442695, %v236_v24 }
 0x2ba   :  { %v403_v26 = vpop.xlane.xlu0 %402 }
 0x2bb   :  { %2369 = vpow2.f32 %v237_v25  ;;  %v404_v27 = vsub.f32 %v398_v20, %v403_v26  ;;  %v2674_v26 = vadd.f32 %v2574_v7, %v2579_v8 }
 0x2bd   :  { %v405_v28 = vmul.f32 1.442695, %v404_v27 }
 0x2bf   :  { %2371 = vpow2.f32 %v405_v28 }
 0x2c8   :  { %v2370_v29 = vpop.eup %2369 }
 0x2c9   :  { %v239_v30 = vsel %vm158_vm2, %v2370_v29, 0.0 }
 0x2ca   :  { %240 = vadd.xlane.f32.xlu0 %v239_v30 }
 0x2cc   :  { %v2372_v31 = vpop.eup %2371 }
 0x2cd   :  { %v407_v32 = vsel %vm158_vm2, %v2372_v31, 0.0 }
 0x2ce   :  { %408 = vadd.xlane.f32.xlu1 %v407_v32 }
 0x2df   :  { %415 = vrot.lane.b32.xlu1 %v2582_v10, %s2497_s3 }
 0x2e0   :  { %247 = vrot.lane.b32.xlu0 %v2582_v10, %s2498_s8 }
 0x2e3   :  { %492 = vrot.lane.b32.xlu1 %v2556_v3, %s2499_s9 }
 0x2e4   :  { %647 = vrot.lane.b32.xlu0 %v2582_v10, %s2500_s10 }
 0x2e7   :  { %645 = vrot.lane.b32.xlu1 %v2582_v10, %s2501_s11 }
 0x353   :  { %v241_v33 = vpop.xlane.xlu0 %240 }
 0x354   :  { %2373 = vrcp.f32 %v241_v33 }
 0x357   :  { %v409_v34 = vpop.xlane.xlu1 %408  ;;  %v248_v35 = vpop.permute.xlu0 %247 }
 0x358   :  { %2375 = vrcp.f32 %v409_v34  ;;  %2235 = vmatpush3.msra.mxu1 %v248_v35 }
 0x359   :  { %2244 = vmatprep.subr.mxu1 %v2492_v6 }
 0x35b   :  { %v416_v36 = vpop.permute.xlu1 %415  ;;  %v648_v51 = vpop.permute.xlu0 %647 }
 0x35f   :  { %v2620_v37 = vpop.permute.xlu1 %492 }
 0x360   :  { %2250 = vmatpush3.msra.mxu0 %v2620_v37 }
 0x361   :  { %v2374_v38 = vpop.eup %2373  ;;  %2259 = vmatprep.subr.mxu0 %v2492_v6 }
 0x362   :  { %v243_v39 = vmul.f32 %v2374_v38, %v241_v33 }
 0x363   :  { %v646_v53 = vpop.permute.xlu1 %645 }
 0x364   :  { %v244_v40 = vsub.f32 2.0, %v243_v39 }
 0x365   :  { %v2376_v41 = vpop.eup %2375 }
 0x366   :  { %v245_v42 = vmul.f32 %v2374_v38, %v244_v40  ;;  %v411_v43 = vmul.f32 %v2376_v41, %v409_v34 }
 0x368   :  { %v246_v44 = vmul.f32 %v2370_v29, %v245_v42  ;;  %v412_v45 = vsub.f32 2.0, %v411_v43 }
 0x36a   :  { %v413_v46 = vmul.f32 %v2376_v41, %v412_v45  ;;  %2237 = vmatmul.mubr.msk.f32.vlgmr.msra.gmra.mxu1 %vm158_vm2, %v246_v44 }
 0x36b   :  { %2245 = vmatpush3.msra.mxu1 %v416_v36  ;;  %2246 = vmatprep.mubr.msk.f32.mxu1 %vm2493_vm1, %v2492_v6 }
 0x36c   :  { %v414_v47 = vmul.f32 %v2372_v31, %v413_v46  ;;  %2254 = vmatprep.subr.mxu1 %v2492_v6  ;;  %v2712_v46 = vld [vmem:[#allocation5 + $0x8] sm:$0xff] }
 0x36e   :  { %2247 = vmatmul.mubr.msk.f32.vlgmr.msra.gmra.mxu1 %vm158_vm2, %v414_v47 }
 0x36f   :  { %2256 = vmatprep.mubr.msk.f32.mxu1 %vm2493_vm1, %v2492_v6 }
 0x42a   :  { %v319_v48 = vpop.f32.mrf.mxu1 }
 0x42c   :  { %v2238_v49 = vpop.f32.mrf.mxu1 }
 0x42e   :  { %v487_v50 = vpop.f32.mrf.mxu1 }
 0x42f   :  { %2252 = vmatmul.mubr.msk.f32.vlgmr.msra.gmra.mxu0 %vm158_vm2, %v487_v50 }
 0x430   :  { %2260 = vmatpush3.xpose.msk.msra.mxu0 %vm158_vm2, %v648_v51  ;;  %v2248_v52 = vpop.f32.mrf.mxu1  ;;  %2261 = vmatprep.mubr.msk.f32.mxu0 %vm2493_vm1, %v2492_v6 }
 0x431   :  { %2269 = vmatprep.subr.mxu0 %v2492_v6 }
 0x433   :  { %2262 = vmatmul.mubr.msk.f32.vlgmr.msra.gmra.mxu0 %vm158_vm2, %v646_v53 }
 0x434   :  { %2271 = vmatprep.mubr.msk.f32.mxu0 %vm2493_vm1, %v2492_v6 }
 0x4ef   :  { %v2639_v54 = vpop.f32.mrf.mxu0 }
 0x4f1   :  { %v2253_v55 = vpop.f32.mrf.mxu0 }
 0x4f3   :  { %v719_v56 = vpop.f32.mrf.mxu0 }
 0x4f4   :  { %v720_v57 = vadd.f32 %v719_v56, %v2601_v14 }
 0x4f5   :  { %v2263_v58 = vpop.f32.mrf.mxu0 }
 0x4f6   :  { %v723_v59 = vsel %vm158_vm2, %v720_v57, -inf }
 0x4f7   :  { %724 = vmax.xlane.f32.xlu0 %v723_v59 }
 0x50d   :  { %569 = vrot.lane.b32.xlu0 %v2561_v4, %s2499_s9 }
 0x511   :  { %893 = vrot.lane.b32.xlu0 %v2582_v10, %s2502_s12 }
 0x580   :  { %v725_v60 = vpop.xlane.xlu0 %724 }
 0x581   :  { %v726_v61 = vsub.f32 %v720_v57, %v725_v60 }
 0x583   :  { %v727_v62 = vmul.f32 1.442695, %v726_v61 }
 0x584   :  { %v2647_v63 = vpop.permute.xlu0 %569 }
 0x585   :  { %2377 = vpow2.f32 %v727_v62  ;;  %2255 = vmatpush3.msra.mxu1 %v2647_v63 }
 0x586   :  { %2257 = vmatmul.mubr.msk.f32.vlgmr.msra.gmra.mxu1 %vm158_vm2, %v319_v48  ;;  %2264 = vmatprep.subr.mxu1 %v2492_v6 }
 0x587   :  { %2266 = vmatprep.mubr.msk.f32.mxu1 %vm2493_vm1, %v2492_v6 }
 0x588   :  { %v894_v16 = vpop.permute.xlu0 %893 }
 0x592   :  { %v2378_v2 = vpop.eup %2377 }
 0x593   :  { %v729_v3 = vsel %vm158_vm2, %v2378_v2, 0.0 }
 0x594   :  { %730 = vadd.xlane.f32.xlu1 %v729_v3 }
 0x5a5   :  { %737 = vrot.lane.b32.xlu1 %v2582_v10, %s2503_s13 }
 0x5a9   :  { %891 = vrot.lane.b32.xlu1 %v2582_v10, %s2504_s14 }
 0x61d   :  { %v731_v4 = vpop.xlane.xlu1 %730 }
 0x61e   :  { %2379 = vrcp.f32 %v731_v4 }
 0x621   :  { %v738_v5 = vpop.permute.xlu1 %737 }
 0x622   :  { %2265 = vmatpush3.msra.mxu1 %v738_v5 }
 0x623   :  { %2274 = vmatprep.subr.mxu1 %v2492_v6 }
 0x625   :  { %v892_v17 = vpop.permute.xlu1 %891 }
 0x62b   :  { %v2380_v9 = vpop.eup %2379 }
 0x62c   :  { %v733_v11 = vmul.f32 %v2380_v9, %v731_v4 }
 0x62e   :  { %v734_v12 = vsub.f32 2.0, %v733_v11 }
 0x630   :  { %v735_v13 = vmul.f32 %v2380_v9, %v734_v12 }
 0x632   :  { %v736_v15 = vmul.f32 %v2378_v2, %v735_v13 }
 0x634   :  { %2267 = vmatmul.mubr.msk.f32.vlgmr.msra.gmra.mxu1 %vm158_vm2, %v736_v15 }
 0x635   :  { %2275 = vmatpush3.xpose.msk.msra.mxu1 %vm158_vm2, %v894_v16  ;;  %2276 = vmatprep.mubr.msk.f32.mxu1 %vm2493_vm1, %v2492_v6 }
 0x636   :  { %2284 = vmatprep.subr.mxu1 %v2492_v6 }
 0x638   :  { %2277 = vmatmul.mubr.msk.f32.vlgmr.msra.gmra.mxu1 %vm158_vm2, %v892_v17 }
 0x639   :  { %2286 = vmatprep.mubr.msk.f32.mxu1 %vm2493_vm1, %v2492_v6 }
 0x646   :  { %v641_v18 = vpop.f32.mrf.mxu1 }
 0x647   :  { %v642_v40 = vadd.f32 %v641_v18, %v2639_v54 }
 0x648   :  { %v2258_v19 = vpop.f32.mrf.mxu1 }
 0x6f4   :  { %v809_v20 = vpop.f32.mrf.mxu1 }
 0x6f6   :  { %v2268_v21 = vpop.f32.mrf.mxu1 }
 0x6f8   :  { %v965_v22 = vpop.f32.mrf.mxu1 }
 0x6f9   :  { %v966_v23 = vadd.f32 %v965_v22, %v2601_v14 }
 0x6fa   :  { %v2278_v24 = vpop.f32.mrf.mxu1 }
 0x6fb   :  { %v969_v25 = vsel %vm158_vm2, %v966_v23, -inf }
 0x6fc   :  { %970 = vmax.xlane.f32.xlu0 %v969_v25 }
 0x712   :  { %814 = vrot.lane.b32.xlu0 %v2552_v1, %s2499_s9 }
 0x716   :  { %1145 = vrot.lane.b32.xlu0 %v2674_v26, %s2495_s6 }
 0x71a   :  { %1311 = vrot.lane.b32.xlu0 %v2674_v26, %s2494_s5 }
 0x785   :  { %v971_v27 = vpop.xlane.xlu0 %970 }
 0x786   :  { %v972_v28 = vsub.f32 %v966_v23, %v971_v27 }
 0x788   :  { %v973_v14 = vmul.f32 1.442695, %v972_v28 }
 0x789   :  { %v2680_v29 = vpop.permute.xlu0 %814 }
 0x78a   :  { %2381 = vpow2.f32 %v973_v14  ;;  %2270 = vmatpush3.msra.mxu0 %v2680_v29 }
 0x78b   :  { %2272 = vmatmul.mubr.msk.f32.vlgmr.msra.gmra.mxu0 %vm158_vm2, %v809_v20  ;;  %2279 = vmatprep.subr.mxu0 %v2492_v6 }
 0x78c   :  { %2281 = vmatprep.mubr.msk.f32.mxu0 %vm2493_vm1, %v2492_v6 }
 0x78d   :  { %v1146_v38 = vpop.permute.xlu0 %1145 }
 0x791   :  { %v1312_v39 = vpop.permute.xlu0 %1311 }
 0x797   :  { %v2382_v1 = vpop.eup %2381 }
 0x798   :  { %v975_v7 = vsel %vm158_vm2, %v2382_v1, 0.0 }
 0x799   :  { %976 = vadd.xlane.f32.xlu1 %v975_v7 }
 0x7aa   :  { %983 = vrot.lane.b32.xlu1 %v2582_v10, %s2505_s15 }
 0x7ae   :  { %1313 = vrot.lane.b32.xlu1 %v2674_v26, %s2496_s7 }
 0x822   :  { %v977_v30 = vpop.xlane.xlu1 %976 }
 0x823   :  { %2383 = vrcp.f32 %v977_v30 }
 0x826   :  { %v984_v31 = vpop.permute.xlu1 %983 }
 0x827   :  { %2280 = vmatpush3.msra.mxu0 %v984_v31 }
 0x828   :  { %2289 = vmatprep.subr.mxu0 %v2492_v6 }
 0x82a   :  { %v1314_v10 = vpop.permute.xlu1 %1313 }
 0x830   :  { %v2384_v32 = vpop.eup %2383 }
 0x831   :  { %v979_v33 = vmul.f32 %v2384_v32, %v977_v30 }
 0x833   :  { %v980_v34 = vsub.f32 2.0, %v979_v33 }
 0x835   :  { %v981_v35 = vmul.f32 %v2384_v32, %v980_v34 }
 0x837   :  { %v982_v36 = vmul.f32 %v2382_v1, %v981_v35 }
 0x839   :  { %2282 = vmatmul.mubr.msk.f32.vlgmr.msra.gmra.mxu0 %vm158_vm2, %v982_v36 }
 0x83a   :  { %2290 = vmatpush3.xpose.msk.msra.mxu0 %vm158_vm2, %v1146_v38  ;;  %2291 = vmatprep.mubr.msk.f32.mxu0 %vm2493_vm1, %v2492_v6 }
 0x83b   :  { %2299 = vmatprep.subr.mxu0 %v2492_v6 }
 0x83d   :  { %2292 = vmatmul.mubr.msk.f32.vlgmr.msra.gmra.mxu0 %vm158_vm2, %v2674_v26 }
 0x83e   :  { %2300 = vmatpush3.xpose.msk.msra.mxu0 %vm158_vm2, %v1314_v10  ;;  %2301 = vmatprep.mubr.msk.f32.mxu0 %vm2493_vm1, %v2492_v6 }
 0x83f   :  { %2309 = vmatprep.subr.mxu0 %v2492_v6 }
 0x841   :  { %2302 = vmatmul.mubr.msk.f32.vlgmr.msra.gmra.mxu0 %vm158_vm2, %v1312_v39 }
 0x842   :  { %2310 = vmatpush3.msra.mxu0 %v2620_v37  ;;  %2311 = vmatprep.mubr.msk.f32.mxu0 %vm2493_vm1, %v2492_v6 }
 0x843   :  { %2319 = vmatprep.subr.mxu0 %v2492_v6 }
 0x84b   :  { %v886_v41 = vpop.f32.mrf.mxu0 }
 0x84c   :  { %v2710_v42 = vadd.f32 %v886_v41, %v642_v40 }
 0x84d   :  { %v2273_v43 = vpop.f32.mrf.mxu0 }
 0x8f9   :  { %v1055_v44 = vpop.f32.mrf.mxu0 }
 0x8fb   :  { %v2283_v45 = vpop.f32.mrf.mxu0 }
 0x8fd   :  { %v1217_v47 = vpop.f32.mrf.mxu0 }
 0x8fe   :  { %v1218_v48 = vadd.f32 %v1217_v47, %v2712_v46 }
 0x8ff   :  { %v2293_v49 = vpop.f32.mrf.mxu0 }
 0x900   :  { %v1221_v37 = vsel %vm158_vm2, %v1218_v48, -inf }
 0x901   :  { %1222 = vmax.xlane.f32.xlu1 %v1221_v37  ;;  %v1385_v50 = vpop.f32.mrf.mxu0 }
 0x902   :  { %v1386_v51 = vadd.f32 %v1385_v50, %v2712_v46 }
 0x903   :  { %v2303_v52 = vpop.f32.mrf.mxu0 }
 0x904   :  { %v1389_v53 = vsel %vm158_vm2, %v1386_v51, -inf }
 0x905   :  { %1390 = vmax.xlane.f32.xlu0 %v1389_v53 }
 0x912   :  { %1235 = vrot.lane.b32.xlu1 %v2674_v26, %s2498_s8 }
 0x98a   :  { %v1223_v54 = vpop.xlane.xlu1 %1222 }
 0x98b   :  { %v1224_v55 = vsub.f32 %v1218_v48, %v1223_v54 }
 0x98d   :  { %v1225_v56 = vmul.f32 1.442695, %v1224_v55 }
 0x98e   :  { %v1391_v57 = vpop.xlane.xlu0 %1390  ;;  %v1236_v3 = vpop.permute.xlu1 %1235 }
 0x98f   :  { %2385 = vpow2.f32 %v1225_v56  ;;  %v1392_v58 = vsub.f32 %v1386_v51, %v1391_v57 }
 0x991   :  { %v1393_v59 = vmul.f32 1.442695, %v1392_v58 }
 0x993   :  { %2387 = vpow2.f32 %v1393_v59 }
 0x99c   :  { %v2386_v60 = vpop.eup %2385 }
 0x99d   :  { %v1227_v61 = vsel %vm158_vm2, %v2386_v60, 0.0 }
 0x99e   :  { %1228 = vadd.xlane.f32.xlu0 %v1227_v61 }
 0x9a0   :  { %v2388_v62 = vpop.eup %2387 }
 0x9a1   :  { %v1395_v2 = vsel %vm158_vm2, %v2388_v62, 0.0 }
 0x9a2   :  { %1396 = vadd.xlane.f32.xlu1 %v1395_v2 }
 0x9b3   :  { %1403 = vrot.lane.b32.xlu1 %v2674_v26, %s2497_s3 }
 0x9b4   :  { %1060 = vrot.lane.b32.xlu0 %v2550_v0, %s2499_s9 }
 0x9b7   :  { %1625 = vrot.lane.b32.xlu1 %v2674_v26, %s2501_s11 }
 0x9b8   :  { %1627 = vrot.lane.b32.xlu0 %v2674_v26, %s2500_s10 }
 0xa27   :  { %v1229_v4 = vpop.xlane.xlu0 %1228 }
 0xa28   :  { %2389 = vrcp.f32 %v1229_v4 }
 0xa2b   :  { %v1397_v5 = vpop.xlane.xlu1 %1396  ;;  %v2730_v9 = vpop.permute.xlu0 %1060 }
 0xa2c   :  { %2391 = vrcp.f32 %v1397_v5  ;;  %2285 = vmatpush3.msra.mxu1 %v2730_v9 }
 0xa2d   :  { %2287 = vmatmul.mubr.msk.f32.vlgmr.msra.gmra.mxu1 %vm158_vm2, %v1055_v44  ;;  %2294 = vmatprep.subr.mxu1 %v2492_v6 }
 0xa2e   :  { %2295 = vmatpush3.msra.mxu1 %v1236_v3  ;;  %2296 = vmatprep.mubr.msk.f32.mxu1 %vm2493_vm1, %v2492_v6 }
 0xa2f   :  { %2304 = vmatprep.subr.mxu1 %v2492_v6  ;;  %v1404_v20 = vpop.permute.xlu1 %1403  ;;  %v1628_v14 = vpop.permute.xlu0 %1627 }
 0xa33   :  { %v1626_v1 = vpop.permute.xlu1 %1625 }
 0xa35   :  { %v2390_v0 = vpop.eup %2389 }
 0xa36   :  { %v1231_v11 = vmul.f32 %v2390_v0, %v1229_v4 }
 0xa38   :  { %v1232_v12 = vsub.f32 2.0, %v1231_v11 }
 0xa39   :  { %v2392_v13 = vpop.eup %2391 }
 0xa3a   :  { %v1233_v15 = vmul.f32 %v2390_v0, %v1232_v12  ;;  %v1399_v16 = vmul.f32 %v2392_v13, %v1397_v5 }
 0xa3c   :  { %v1234_v17 = vmul.f32 %v2386_v60, %v1233_v15  ;;  %v1400_v18 = vsub.f32 2.0, %v1399_v16 }
 0xa3e   :  { %v1401_v19 = vmul.f32 %v2392_v13, %v1400_v18  ;;  %2297 = vmatmul.mubr.msk.f32.vlgmr.msra.gmra.mxu1 %vm158_vm2, %v1234_v17 }
 0xa3f   :  { %2305 = vmatpush3.msra.mxu1 %v1404_v20  ;;  %2306 = vmatprep.mubr.msk.f32.mxu1 %vm2493_vm1, %v2492_v6 }
 0xa40   :  { %v1402_v21 = vmul.f32 %v2388_v62, %v1401_v19  ;;  %2314 = vmatprep.subr.mxu1 %v2492_v6 }
 0xa42   :  { %2307 = vmatmul.mubr.msk.f32.vlgmr.msra.gmra.mxu1 %vm158_vm2, %v1402_v21 }
 0xa43   :  { %2315 = vmatpush3.msra.mxu1 %v2647_v63  ;;  %2316 = vmatprep.mubr.msk.f32.mxu1 %vm2493_vm1, %v2492_v6 }
 0xa44   :  { %2324 = vmatprep.subr.mxu1 %v2492_v6 }
 0xaed   :  { %v1132_v22 = vpop.f32.mrf.mxu1 }
 0xaee   :  { %v2748_v23 = vadd.f32 %v1132_v22, %v2710_v42 }
 0xaef   :  { %v2288_v24 = vpop.f32.mrf.mxu1 }
 0xafe   :  { %v1307_v25 = vpop.f32.mrf.mxu1 }
 0xaff   :  { %2317 = vmatmul.mubr.msk.f32.vlgmr.msra.gmra.mxu1 %vm158_vm2, %v1307_v25 }
 0xb00   :  { %v2298_v27 = vpop.f32.mrf.mxu1  ;;  %2326 = vmatprep.mubr.msk.f32.mxu1 %vm2493_vm1, %v2492_v6 }
 0xb02   :  { %v1475_v28 = vpop.f32.mrf.mxu1 }
 0xb03   :  { %2312 = vmatmul.mubr.msk.f32.vlgmr.msra.gmra.mxu0 %vm158_vm2, %v1475_v28 }
 0xb04   :  { %2320 = vmatpush3.xpose.msk.msra.mxu0 %vm158_vm2, %v1628_v14  ;;  %v2308_v63 = vpop.f32.mrf.mxu1  ;;  %2321 = vmatprep.mubr.msk.f32.mxu0 %vm2493_vm1, %v2492_v6 }
 0xb05   :  { %2329 = vmatprep.subr.mxu0 %v2492_v6 }
 0xb07   :  { %2322 = vmatmul.mubr.msk.f32.vlgmr.msra.gmra.mxu0 %vm158_vm2, %v1626_v1 }
 0xb08   :  { %2330 = vmatpush3.msra.mxu0 %v2680_v29  ;;  %2331 = vmatprep.mubr.msk.f32.mxu0 %vm2493_vm1, %v2492_v6 }
 0xb09   :  { %2339 = vmatprep.subr.mxu0 %v2492_v6 }
 0xbbf   :  { %v1621_v7 = vpop.f32.mrf.mxu1 }
 0xbc1   :  { %v2318_v30 = vpop.f32.mrf.mxu1 }
 0xbc3   :  { %v1548_v31 = vpop.f32.mrf.mxu0 }
 0xbc4   :  { %v1622_v32 = vadd.f32 %v1621_v7, %v1548_v31 }
 0xbc5   :  { %v2313_v33 = vpop.f32.mrf.mxu0 }
 0xbc7   :  { %v1699_v34 = vpop.f32.mrf.mxu0 }
 0xbc8   :  { %v1700_v35 = vadd.f32 %v1699_v34, %v2712_v46 }
 0xbc9   :  { %v2323_v36 = vpop.f32.mrf.mxu0 }
 0xbca   :  { %v1703_v38 = vsel %vm158_vm2, %v1700_v35, -inf }
 0xbcb   :  { %1704 = vmax.xlane.f32.xlu0 %v1703_v38 }
 0xbe1   :  { %1717 = vrot.lane.b32.xlu0 %v2674_v26, %s2503_s13 }
 0xbe5   :  { %1867 = vrot.lane.b32.xlu0 %v2674_v26, %s2504_s14 }
 0xc54   :  { %v1705_v29 = vpop.xlane.xlu0 %1704 }
 0xc55   :  { %v1706_v10 = vsub.f32 %v1700_v35, %v1705_v29 }
 0xc57   :  { %v1707_v39 = vmul.f32 1.442695, %v1706_v10 }
 0xc58   :  { %v1718_v40 = vpop.permute.xlu0 %1717 }
 0xc59   :  { %2393 = vpow2.f32 %v1707_v39  ;;  %2325 = vmatpush3.msra.mxu1 %v1718_v40 }
 0xc5a   :  { %2334 = vmatprep.subr.mxu1 %v2492_v6 }
 0xc5c   :  { %v1868_v50 = vpop.permute.xlu0 %1867 }
 0xc66   :  { %v2394_v41 = vpop.eup %2393 }
 0xc67   :  { %v1709_v42 = vsel %vm158_vm2, %v2394_v41, 0.0 }
 0xc68   :  { %1710 = vadd.xlane.f32.xlu1 %v1709_v42 }
 0xc79   :  { %1869 = vrot.lane.b32.xlu1 %v2674_v26, %s2502_s12 }
 0xcf1   :  { %v1711_v43 = vpop.xlane.xlu1 %1710 }
 0xcf2   :  { %2395 = vrcp.f32 %v1711_v43 }
 0xcf5   :  { %v1870_v37 = vpop.permute.xlu1 %1869 }
 0xcff   :  { %v2396_v44 = vpop.eup %2395 }
 0xd00   :  { %v1713_v45 = vmul.f32 %v2396_v44, %v1711_v43 }
 0xd02   :  { %v1714_v47 = vsub.f32 2.0, %v1713_v45 }
 0xd04   :  { %v1715_v48 = vmul.f32 %v2396_v44, %v1714_v47 }
 0xd06   :  { %v1716_v49 = vmul.f32 %v2394_v41, %v1715_v48 }
 0xd08   :  { %2327 = vmatmul.mubr.msk.f32.vlgmr.msra.gmra.mxu1 %vm158_vm2, %v1716_v49 }
 0xd09   :  { %2335 = vmatpush3.xpose.msk.msra.mxu1 %vm158_vm2, %v1870_v37  ;;  %2336 = vmatprep.mubr.msk.f32.mxu1 %vm2493_vm1, %v2492_v6 }
 0xd0a   :  { %2344 = vmatprep.subr.mxu1 %v2492_v6 }
 0xd0c   :  { %2337 = vmatmul.mubr.msk.f32.vlgmr.msra.gmra.mxu1 %vm158_vm2, %v1868_v50 }
 0xd0d   :  { %2345 = vmatpush3.msra.mxu1 %v2730_v9  ;;  %2346 = vmatprep.mubr.msk.f32.mxu1 %vm2493_vm1, %v2492_v6 }
 0xdc8   :  { %v1789_v51 = vpop.f32.mrf.mxu1 }
 0xdc9   :  { %2332 = vmatmul.mubr.msk.f32.vlgmr.msra.gmra.mxu0 %vm158_vm2, %v1789_v51 }
 0xdca   :  { %v2328_v52 = vpop.f32.mrf.mxu1  ;;  %2341 = vmatprep.mubr.msk.f32.mxu0 %vm2493_vm1, %v2492_v6 }
 0xdcc   :  { %v1941_v53 = vpop.f32.mrf.mxu1 }
 0xdcd   :  { %v1942_v54 = vadd.f32 %v1941_v53, %v2712_v46 }
 0xdce   :  { %v2338_v55 = vpop.f32.mrf.mxu1 }
 0xdcf   :  { %v1945_v56 = vsel %vm158_vm2, %v1942_v54, -inf }
 0xdd0   :  { %1946 = vmax.xlane.f32.xlu1 %v1945_v56 }
 0xde1   :  { %1137 = vrot.lane.b32.xlu1 %v2579_v8, %s2499_s9 }
 0xe59   :  { %v1947_v57 = vpop.xlane.xlu1 %1946 }
 0xe5a   :  { %v1948_v58 = vsub.f32 %v1942_v54, %v1947_v57 }
 0xe5c   :  { %v1949_v59 = vmul.f32 1.442695, %v1948_v58 }
 0xe5d   :  { %v1138_v60 = vpop.permute.xlu1 %1137 }
 0xe5e   :  { %2397 = vpow2.f32 %v1949_v59  ;;  %v1140_v61 = vadd.f32 %v1138_v60, %v2748_v23 }
 0xe60   :  { %1141 = vst.msk [vmem:[#allocation8] sm:$0xff] %vm72_vm0, %v1140_v61 }
 0xe6b   :  { %v2398_v6 = vpop.eup %2397 }
 0xe6c   :  { %v1951_v62 = vsel %vm158_vm2, %v2398_v6, 0.0 }
 0xe6d   :  { %1952 = vadd.xlane.f32.xlu0 %v1951_v62 }
 0xe83   :  { %1959 = vrot.lane.b32.xlu0 %v2674_v26, %s2505_s15 }
 0xe89   :  { %v1862_v46 = vpop.f32.mrf.mxu0 }
 0xe8a   :  { %v1866_v2 = vadd.f32 %v1862_v46, %v1622_v32 }
 0xe8b   :  { %v2333_v3 = vpop.f32.mrf.mxu0 }
 0xef6   :  { %v1953_v8 = vpop.xlane.xlu0 %1952 }
 0xef7   :  { %2399 = vrcp.f32 %v1953_v8 }
 0xefa   :  { %v1960_v4 = vpop.permute.xlu0 %1959 }
 0xefb   :  { %2340 = vmatpush3.msra.mxu0 %v1960_v4 }
 0xf04   :  { %v2400_v5 = vpop.eup %2399 }
 0xf05   :  { %v1955_v9 = vmul.f32 %v2400_v5, %v1953_v8 }
 0xf07   :  { %v1956_v0 = vsub.f32 2.0, %v1955_v9 }
 0xf09   :  { %v1957_v11 = vmul.f32 %v2400_v5, %v1956_v0 }
 0xf0b   :  { %v1958_v12 = vmul.f32 %v2398_v6, %v1957_v11 }
 0xf0d   :  { %2342 = vmatmul.mubr.msk.f32.vlgmr.msra.gmra.mxu0 %vm158_vm2, %v1958_v12 }
 0xfcd   :  { %v2031_v13 = vpop.f32.mrf.mxu0 }
 0xfce   :  { %2347 = vmatmul.mubr.msk.f32.vlgmr.msra.gmra.mxu1 %vm158_vm2, %v2031_v13 }
 0xfcf   :  { %v2343_v15 = vpop.f32.mrf.mxu0 }
0x108e   :  { %v2104_v16 = vpop.f32.mrf.mxu1 }
0x108f   :  { %v2108_v26 = vadd.f32 %v2104_v16, %v1866_v2 }
0x1090   :  { %v2348_v17 = vpop.f32.mrf.mxu1 }
0x1091   :  { %v2109_v18 = vadd.f32 %v2108_v26, %v1138_v60 }
0x1093   :  { %2110 = vst.msk [vmem:[#allocation8 + $0x8] sm:$0xff] %vm72_vm0, %v2109_v18 }
0x1094   :  { %2472 = shalt.err (!%p2469_p5)
}
0x1095   :  { %2122 = dma.vmem_to_hbm [thread:$0]  %s2117_s17, 256, %s2807_s4, [#allocation4], %s2489_s20, %s2489_s20, %s2490_s21  }
0x1096   :  { %2485 = dma.done.wait [#allocation4], 256  }
0x1097   :  { %2486 = vsyncadd [#allocation4], 4294967040 }
0x1098   :  { %2126 = vsyncpa [#allocation3], 1 }
0x1099   :  { %2127 = vsyncpa [#allocation6], 1 }
0x109a   :  { %2128 = vsyncpa [#allocation4], 1 }

</bundles_post_ra>
